<compile_context>
chip_gen: v6e
topology: v6e:2x2x1
jax: 0.10.0
libtpu: 0.0.40
codegen_flags: <defaults>
</compile_context>

<pallas_src>
import functools

import numpy as np
import jax
import jax.numpy as jnp
from jax import lax
from jax.experimental import pallas as pl
from jax.experimental.pallas import tpu as pltpu


def _round_up(n, m):
    return ((n + m - 1) // m) * m


def _pick_batch_tile(b_pad, cap=2048):
    """Largest tile in {cap..128} (multiples of 128) dividing b_pad, keeping
    >=2 grid steps once b_pad >= 256 (so v7x can shard across both cores)."""
    max_tile = b_pad if b_pad < 256 else b_pad // 2
    for cand in (4096, 2048, 1024, 512, 256, 128):
        if cand <= cap and cand <= max_tile and b_pad % cand == 0:
            return cand
    return 128


def _apply_activation(h, activation):
    if activation == "relu":
        return jnp.maximum(h, 0.0)
    if activation == "tanh":
        return jnp.tanh(h)
    if activation == "sigmoid":
        return jax.nn.sigmoid(h)
    if activation == "leaky_relu":
        return jnp.where(h > 0.0, h, 0.01 * h)
    raise ValueError(f"Activation function {activation} not recognized.")


# ----------------------------- Pallas kernel --------------------------------
def _mlp_kernel(x_ref, *refs, activation="relu", matmul_dtype=None):
    """Fused MLP; transposes are folded into the first/last matmuls.

    x_ref : (batch_tile, D_in)          native layout, no wrapper transpose.
    refs  : (w0, b0, ..., wL, bL, out_ref)
            w_l   : (d_out, d_in)       PyTorch layout, consumed directly.
            b_l   : (d_out, 1)  hidden  (broadcast along lanes/batch)
                    (1, D_out)  last    (broadcast along sublanes/batch)
    out_ref: (batch_tile, D_out)        native layout, no wrapper transpose.

    Intermediate activations are (d_hidden, batch_tile): batch on lanes, so
    bias-add / activation are lane-dense VPU ops.
    """
    out_ref = refs[-1]
    wb_refs = refs[:-1]
    n_layers = len(wb_refs) // 2

    h = x_ref[...].astype(jnp.float32)      # (bt, D_in), batch-major
    batch_major = True
    for l in range(n_layers):
        w = wb_refs[2 * l][...]              # (d_out, d_in)
        b = wb_refs[2 * l + 1][...]
        is_last = (l == n_layers - 1)
        if matmul_dtype is not None:         # optional bf16 MXU operands
            w = w.astype(matmul_dtype)
            h = h.astype(matmul_dtype)

        if is_last:
            if batch_major:                  # single-layer MLP: (bt,d_in)x(d_out,d_in)
                h = lax.dot_general(h, w, (((1,), (1,)), ((), ())),
                                    preferred_element_type=jnp.float32)
            else:                            # (d_in,bt) x (d_out,d_in) -> (bt,d_out)
                h = lax.dot_general(h, w, (((0,), (1,)), ((), ())),
                                    preferred_element_type=jnp.float32)
            h = h + b                        # b: (1, D_out)
        elif batch_major:                    # first layer: fold input transpose
            # (d_out,d_in) x (bt,d_in) contracted on d_in -> (d_out, bt)
            h = lax.dot_general(w, h, (((1,), (1,)), ((), ())),
                                preferred_element_type=jnp.float32)
            h = h + b                        # b: (d_out, 1)
            batch_major = False
        else:                                # middle layers: (d_out,d_in)@(d_in,bt)
            h = jnp.dot(w, h, preferred_element_type=jnp.float32) + b

        if not is_last:
            h = _apply_activation(h, activation)

    out_ref[...] = h.astype(out_ref.dtype)


# ------------------------------ Wrapper --------------------------------------
def mlp_forward(x, weights, biases, *, activation="relu", matmul_dtype=None,
                max_batch_tile=2048):
    """x: (B, D_in). weights[l]: (d_out, d_in). biases: (d,1) hidden, (1,d) last."""
    B, D_in = x.shape
    D_out = weights[-1].shape[0]

    if B == 0:                                   # zero-size grid guard
        return jnp.zeros((0, D_out), x.dtype)

    # Pad only to the lane width (128); tile chosen to divide B_pad.
    B_pad = _round_up(B, 128)
    batch_tile = _pick_batch_tile(B_pad, cap=max_batch_tile)
    grid = (B_pad // batch_tile,)

    x_p = jnp.pad(x, ((0, B_pad - B), (0, 0))) if B_pad != B else x

    in_specs = [pl.BlockSpec((batch_tile, D_in), lambda i: (i, 0))]
    args = [x_p]
    for w, b in zip(weights, biases):
        in_specs.append(pl.BlockSpec(w.shape, lambda i: (0, 0)))   # resident
        in_specs.append(pl.BlockSpec(b.shape, lambda i: (0, 0)))   # resident
        args.extend([w, b])
    out_spec = pl.BlockSpec((batch_tile, D_out), lambda i: (i, 0))

    kernel = functools.partial(_mlp_kernel, activation=activation,
                               matmul_dtype=matmul_dtype)

    y = pl.pallas_call(
        kernel,
        out_shape=jax.ShapeDtypeStruct((B_pad, D_out), x.dtype),
        grid_spec=pltpu.PrefetchScalarGridSpec(
            num_scalar_prefetch=0,
            grid=grid,
            in_specs=in_specs,
            out_specs=out_spec,
        ),
        compiler_params=pltpu.CompilerParams(
            dimension_semantics=("parallel",),
        ),
    )(*args)

    return y[:B] if B_pad != B else y


# --------------------------- Parameter init ----------------------------------
def make_mlp_params(key, input_sizes, output_sizes, hidden_dims):
    """Orthogonal weights (like nn.init.orthogonal_), zero biases."""
    comb_in = sum(input_sizes)
    comb_out = sum(output_sizes)
    dims = [comb_in, *hidden_dims, comb_out]
    ortho = jax.nn.initializers.orthogonal()
    weights, biases = [], []
    n_layers = len(dims) - 1
    for l in range(n_layers):
        key, sub = jax.random.split(key)
        d_in, d_out = dims[l], dims[l + 1]
        w = ortho(sub, (d_out, d_in), jnp.float32)     # PyTorch layout (out, in)
        is_last = (l == n_layers - 1)
        # Hidden biases broadcast along the lane/batch axis; the last bias
        # broadcasts along the sublane/batch axis of the (bt, D_out) output.
        b = jnp.zeros((1, d_out) if is_last else (d_out, 1), jnp.float32)
        weights.append(w)
        biases.append(b)
    return weights, biases


class MLPPallas:
    """Mirrors leap_c MLP.forward: concat inputs on last dim, run MLP, split."""

    def __init__(self, input_sizes, output_sizes, hidden_dims=(32, 32, 32),
                 activation="relu", key=jax.random.PRNGKey(0),
                 matmul_dtype=None):
        if isinstance(input_sizes, int):
            input_sizes = [input_sizes]
        if isinstance(output_sizes, int):
            output_sizes = [output_sizes]
        self._input_dims = list(input_sizes)
        self._output_dims = list(output_sizes)
        self._activation = activation
        self._matmul_dtype = matmul_dtype
        self.weights, self.biases = make_mlp_params(
            key, input_sizes, output_sizes, hidden_dims)
        # Static (Python int) split points -> jit-compatible jnp.split.
        self._splits = [int(s) for s in np.cumsum(self._output_dims)[:-1]]

    def __call__(self, *xs):
        x = jnp.concatenate(xs, axis=-1) if len(xs) > 1 else xs[0]
        y = mlp_forward(x, self.weights, self.biases,
                        activation=self._activation,
                        matmul_dtype=self._matmul_dtype)
        if len(self._output_dims) == 1:
            return y
        return tuple(jnp.split(y, self._splits, axis=-1))


# Pure-JAX reference for correctness check.
def mlp_ref(x, weights, biases, activation="relu"):
    h = x
    for l, (w, b) in enumerate(zip(weights, biases)):
        h = h @ w.T + b.reshape(1, -1)
        if l != len(weights) - 1:
            h = _apply_activation(h, activation)
    return h


if __name__ == "__main__":
    key = jax.random.PRNGKey(0)
    k_x1, k_x2, k_x3, k_x4, k_params = jax.random.split(key, 5)

    B = 16
    input_sizes = [6, 10]
    output_sizes = [8, 8]
    hidden_dims = (32, 32, 32)

    x1 = jax.random.normal(k_x1, (B, input_sizes[0]), jnp.float32)
    x2 = jax.random.normal(k_x2, (B, input_sizes[1]), jnp.float32)

    model = MLPPallas(input_sizes, output_sizes, hidden_dims, key=k_params)

    # Eager run (f32 path, bitwise-comparable to the reference numerics).
    y1, y2 = model(x1, x2)
    jax.block_until_ready((y1, y2))

    x_cat = jnp.concatenate([x1, x2], axis=-1)
    y_ref = mlp_ref(x_cat, model.weights, model.biases)
    y_cat = jnp.concatenate([y1, y2], axis=-1)
    assert y1.shape == (B, output_sizes[0]) and y2.shape == (B, output_sizes[1])
    assert jnp.allclose(y_cat, y_ref, atol=1e-4, rtol=1e-4)

    # Under jit (split indices are static Python ints).
    jit_fwd = jax.jit(lambda a, b: model(a, b))
    y1j, y2j = jit_fwd(x1, x2)
    jax.block_until_ready((y1j, y2j))
    assert jnp.allclose(jnp.concatenate([y1j, y2j], axis=-1), y_ref,
                        atol=1e-4, rtol=1e-4)

    # Ragged batch (not a multiple of 128): exercised via pad-to-128 + slice.
    x3 = jax.random.normal(k_x3, (13, sum(input_sizes)), jnp.float32)
    y3 = mlp_forward(x3, model.weights, model.biases)
    jax.block_until_ready(y3)
    assert y3.shape == (13, sum(output_sizes))
    assert jnp.allclose(y3, mlp_ref(x3, model.weights, model.biases),
                        atol=1e-4, rtol=1e-4)

    # Mid-size batch: B=300 -> B_pad=384, tile=128, grid=(3,) (>=2 parallel
    # steps keeps both v7x TensorCores busy).
    x4 = jax.random.normal(k_x4, (300, sum(input_sizes)), jnp.float32)
    y4 = mlp_forward(x4, model.weights, model.biases)
    jax.block_until_ready(y4)
    assert jnp.allclose(y4, mlp_ref(x4, model.weights, model.biases),
                        atol=1e-4, rtol=1e-4)

    # Optional bf16 MXU-operand path (f32 accumulate) — looser tolerance.
    y4_bf16 = mlp_forward(x4, model.weights, model.biases,
                          matmul_dtype=jnp.bfloat16)
    jax.block_until_ready(y4_bf16)
    assert jnp.allclose(y4_bf16, mlp_ref(x4, model.weights, model.biases),
                        atol=3e-2, rtol=3e-2)

    print("KERNEL_OK")
</pallas_src>

<mosaic_0001>
module attributes {stable_mosaic.version = 11 : i64} {
  func.func @_mlp_kernel(%arg0: i32, %arg1: memref<128x16xf32, #tpu.memory_space<vmem>>, %arg2: memref<32x16xf32, #tpu.memory_space<vmem>>, %arg3: memref<32x1xf32, #tpu.memory_space<vmem>>, %arg4: memref<32x32xf32, #tpu.memory_space<vmem>>, %arg5: memref<32x1xf32, #tpu.memory_space<vmem>>, %arg6: memref<32x32xf32, #tpu.memory_space<vmem>>, %arg7: memref<32x1xf32, #tpu.memory_space<vmem>>, %arg8: memref<16x32xf32, #tpu.memory_space<vmem>>, %arg9: memref<1x16xf32, #tpu.memory_space<vmem>>, %arg10: memref<128x16xf32, #tpu.memory_space<vmem>>) attributes {dimension_semantics = [#tpu.dimension_semantics<parallel>], iteration_bounds = array<i64: 1>, scalar_prefetch = 0 : i64, scratch_operands = 0 : i64, tpu.core_type = #tpu.core_type<tc>, window_params = [{transform_indices = @transform_0, window_bounds = array<i64: 128, 16>}, {pipeline_mode = #tpu.pipeline_mode<synchronous>, transform_indices = @transform_1, window_bounds = array<i64: 32, 16>}, {pipeline_mode = #tpu.pipeline_mode<synchronous>, transform_indices = @transform_2, window_bounds = array<i64: 32, 1>}, {pipeline_mode = #tpu.pipeline_mode<synchronous>, transform_indices = @transform_3, window_bounds = array<i64: 32, 32>}, {pipeline_mode = #tpu.pipeline_mode<synchronous>, transform_indices = @transform_4, window_bounds = array<i64: 32, 1>}, {pipeline_mode = #tpu.pipeline_mode<synchronous>, transform_indices = @transform_5, window_bounds = array<i64: 32, 32>}, {pipeline_mode = #tpu.pipeline_mode<synchronous>, transform_indices = @transform_6, window_bounds = array<i64: 32, 1>}, {pipeline_mode = #tpu.pipeline_mode<synchronous>, transform_indices = @transform_7, window_bounds = array<i64: 16, 32>}, {pipeline_mode = #tpu.pipeline_mode<synchronous>, transform_indices = @transform_8, window_bounds = array<i64: 1, 16>}, {transform_indices = @transform_9, window_bounds = array<i64: 128, 16>}]} {
    %c0 = arith.constant 0 : index
    %c0_0 = arith.constant 0 : index
    %0 = vector.load %arg1[%c0, %c0_0] : memref<128x16xf32, #tpu.memory_space<vmem>>, vector<128x16xf32>
    %c0_1 = arith.constant 0 : index
    %c0_2 = arith.constant 0 : index
    %1 = vector.load %arg2[%c0_1, %c0_2] : memref<32x16xf32, #tpu.memory_space<vmem>>, vector<32x16xf32>
    %c0_3 = arith.constant 0 : index
    %c0_4 = arith.constant 0 : index
    %2 = vector.load %arg3[%c0_3, %c0_4] : memref<32x1xf32, #tpu.memory_space<vmem>>, vector<32x1xf32>
    %cst = arith.constant dense<0.000000e+00> : vector<32x128xf32>
    %3 = tpu.matmul %1, %0, %cst {dimension_numbers = #tpu.dot_dimension_numbers<[1], [1], [0], [0], [0, 0, 1, 0], [], []>} : vector<32x16xf32>, vector<128x16xf32>, vector<32x128xf32> -> vector<32x128xf32>
    %4 = vector.broadcast %2 : vector<32x1xf32> to vector<32x128xf32>
    %5 = arith.addf %3, %4 : vector<32x128xf32>
    %cst_5 = arith.constant 0.000000e+00 : f32
    %6 = vector.broadcast %cst_5 : f32 to vector<32x128xf32>
    %7 = arith.maximumf %5, %6 : vector<32x128xf32>
    %c0_6 = arith.constant 0 : index
    %c0_7 = arith.constant 0 : index
    %8 = vector.load %arg4[%c0_6, %c0_7] : memref<32x32xf32, #tpu.memory_space<vmem>>, vector<32x32xf32>
    %c0_8 = arith.constant 0 : index
    %c0_9 = arith.constant 0 : index
    %9 = vector.load %arg5[%c0_8, %c0_9] : memref<32x1xf32, #tpu.memory_space<vmem>>, vector<32x1xf32>
    %cst_10 = arith.constant dense<0.000000e+00> : vector<32x128xf32>
    %10 = tpu.matmul %8, %7, %cst_10 {dimension_numbers = #tpu.dot_dimension_numbers<[1], [0], [0], [1], [0, 0, 1, 1], [], []>} : vector<32x32xf32>, vector<32x128xf32>, vector<32x128xf32> -> vector<32x128xf32>
    %11 = vector.broadcast %9 : vector<32x1xf32> to vector<32x128xf32>
    %12 = arith.addf %10, %11 : vector<32x128xf32>
    %cst_11 = arith.constant 0.000000e+00 : f32
    %13 = vector.broadcast %cst_11 : f32 to vector<32x128xf32>
    %14 = arith.maximumf %12, %13 : vector<32x128xf32>
    %c0_12 = arith.constant 0 : index
    %c0_13 = arith.constant 0 : index
    %15 = vector.load %arg6[%c0_12, %c0_13] : memref<32x32xf32, #tpu.memory_space<vmem>>, vector<32x32xf32>
    %c0_14 = arith.constant 0 : index
    %c0_15 = arith.constant 0 : index
    %16 = vector.load %arg7[%c0_14, %c0_15] : memref<32x1xf32, #tpu.memory_space<vmem>>, vector<32x1xf32>
    %cst_16 = arith.constant dense<0.000000e+00> : vector<32x128xf32>
    %17 = tpu.matmul %15, %14, %cst_16 {dimension_numbers = #tpu.dot_dimension_numbers<[1], [0], [0], [1], [0, 0, 1, 1], [], []>} : vector<32x32xf32>, vector<32x128xf32>, vector<32x128xf32> -> vector<32x128xf32>
    %18 = vector.broadcast %16 : vector<32x1xf32> to vector<32x128xf32>
    %19 = arith.addf %17, %18 : vector<32x128xf32>
    %cst_17 = arith.constant 0.000000e+00 : f32
    %20 = vector.broadcast %cst_17 : f32 to vector<32x128xf32>
    %21 = arith.maximumf %19, %20 : vector<32x128xf32>
    %c0_18 = arith.constant 0 : index
    %c0_19 = arith.constant 0 : index
    %22 = vector.load %arg8[%c0_18, %c0_19] : memref<16x32xf32, #tpu.memory_space<vmem>>, vector<16x32xf32>
    %c0_20 = arith.constant 0 : index
    %c0_21 = arith.constant 0 : index
    %23 = vector.load %arg9[%c0_20, %c0_21] : memref<1x16xf32, #tpu.memory_space<vmem>>, vector<1x16xf32>
    %cst_22 = arith.constant dense<0.000000e+00> : vector<128x16xf32>
    %24 = tpu.matmul %21, %22, %cst_22 {dimension_numbers = #tpu.dot_dimension_numbers<[0], [1], [1], [0], [0, 1, 1, 0], [], []>} : vector<32x128xf32>, vector<16x32xf32>, vector<128x16xf32> -> vector<128x16xf32>
    %25 = vector.broadcast %23 : vector<1x16xf32> to vector<128x16xf32>
    %26 = arith.addf %24, %25 : vector<128x16xf32>
    %c0_23 = arith.constant 0 : index
    %c0_24 = arith.constant 0 : index
    %27 = vector.load %arg10[%c0_23, %c0_24] : memref<128x16xf32, #tpu.memory_space<vmem>>, vector<128x16xf32>
    tpu.vector_store %arg10[%c0_23, %c0_24], %26 {strides = array<i32>} : memref<128x16xf32, #tpu.memory_space<vmem>>, vector<128x16xf32>,
    return
  }
  func.func @transform_0(%arg0: i32) -> (i32, i32) {
    %c0_i32 = arith.constant 0 : i32
    %c0_i32_0 = arith.constant 0 : i32
    return %arg0, %c0_i32 : i32, i32
  }
  func.func @transform_1(%arg0: i32) -> (i32, i32) {
    %c0_i32 = arith.constant 0 : i32
    %c0_i32_0 = arith.constant 0 : i32
    %c0_i32_1 = arith.constant 0 : i32
    return %c0_i32, %c0_i32_0 : i32, i32
  }
  func.func @transform_2(%arg0: i32) -> (i32, i32) {
    %c0_i32 = arith.constant 0 : i32
    %c0_i32_0 = arith.constant 0 : i32
    %c0_i32_1 = arith.constant 0 : i32
    return %c0_i32, %c0_i32_0 : i32, i32
  }
  func.func @transform_3(%arg0: i32) -> (i32, i32) {
    %c0_i32 = arith.constant 0 : i32
    %c0_i32_0 = arith.constant 0 : i32
    %c0_i32_1 = arith.constant 0 : i32
    return %c0_i32, %c0_i32_0 : i32, i32
  }
  func.func @transform_4(%arg0: i32) -> (i32, i32) {
    %c0_i32 = arith.constant 0 : i32
    %c0_i32_0 = arith.constant 0 : i32
    %c0_i32_1 = arith.constant 0 : i32
    return %c0_i32, %c0_i32_0 : i32, i32
  }
  func.func @transform_5(%arg0: i32) -> (i32, i32) {
    %c0_i32 = arith.constant 0 : i32
    %c0_i32_0 = arith.constant 0 : i32
    %c0_i32_1 = arith.constant 0 : i32
    return %c0_i32, %c0_i32_0 : i32, i32
  }
  func.func @transform_6(%arg0: i32) -> (i32, i32) {
    %c0_i32 = arith.constant 0 : i32
    %c0_i32_0 = arith.constant 0 : i32
    %c0_i32_1 = arith.constant 0 : i32
    return %c0_i32, %c0_i32_0 : i32, i32
  }
  func.func @transform_7(%arg0: i32) -> (i32, i32) {
    %c0_i32 = arith.constant 0 : i32
    %c0_i32_0 = arith.constant 0 : i32
    %c0_i32_1 = arith.constant 0 : i32
    return %c0_i32, %c0_i32_0 : i32, i32
  }
  func.func @transform_8(%arg0: i32) -> (i32, i32) {
    %c0_i32 = arith.constant 0 : i32
    %c0_i32_0 = arith.constant 0 : i32
    %c0_i32_1 = arith.constant 0 : i32
    return %c0_i32, %c0_i32_0 : i32, i32
  }
  func.func @transform_9(%arg0: i32) -> (i32, i32) {
    %c0_i32 = arith.constant 0 : i32
    %c0_i32_0 = arith.constant 0 : i32
    return %arg0, %c0_i32 : i32, i32
  }
}

</mosaic_0001>

<bundles_post_ra>
// kernel: tpu_custom_call.1
= control target key start
LH: loop header
LB: loop body
LE: loop exit
PB: predicated region body
PF: predicated region fallthrough
CT: control target
= control target key end

     0   :  { %vm76_vm0 = vcmask 130048   ;;  %v944_v2 = vmov 0   ;;  %vm254_vm1 = vcmask 261120   ;;  %s1252_s0 = inlined_call_operand.vmem [shape: f32[128,16], index: 0, kind: input, shape index: {}]   ;;  %s1253_s1 = inlined_call_operand.vmem [shape: f32[32,16], index: 1, kind: input, shape index: {}]   ;;  %s1254_s2 = inlined_call_operand.vmem [shape: f32[32,1], index: 2, kind: input, shape index: {}]   ;;  %s1255_s4 = inlined_call_operand.vmem [shape: f32[32,1], index: 4, kind: input, shape index: {}]   ;;  %s1256_s6 = inlined_call_operand.vmem [shape: f32[32,1], index: 6, kind: input, shape index: {}]   ;;  %s1257_s3 = inlined_call_operand.vmem [shape: f32[32,32], index: 3, kind: input, shape index: {}]   ;;  %s1258_s5 = inlined_call_operand.vmem [shape: f32[32,32], index: 5, kind: input, shape index: {}]   ;;  %s1259_s7 = inlined_call_operand.vmem [shape: f32[16,32], index: 7, kind: input, shape index: {}]   ;;  %s1260_s8 = inlined_call_operand.vmem [shape: f32[1,16], index: 8, kind: input, shape index: {}]   ;;  %s1261_s9 = inlined_call_operand.vmem [shape: f32[128,16], index: 9, kind: output, shape index: {}]  }
   0x1   :  { %v47_v0 = vld [vmem:[%s1252_s0 + $0x78] sm:$0xff]  ;;  %v46_v1 = vld [vmem:[%s1252_s0 + $0x70] sm:$0xff]  ;;  %942 = vset.pattern.permute.xlu0 %v944_v2  ;;  %943 = vset.pattern.permute.xlu1 %v944_v2  ;;  %v45_v3 = vld [vmem:[%s1252_s0 + $0x68] sm:$0xff] }
   0x2   :  { %846 = vmatprep.subr.msk.mxu0 %vm76_vm0, %v47_v0  ;;  %v48_v4 = vld [vmem:[%s1253_s1] sm:$0xff]  ;;  %v55_v5 = vld [vmem:[%s1254_s2 + $0x18] sm:$0xff]  ;;  %v53_v6 = vld [vmem:[%s1254_s2 + $0x8] sm:$0xff] }
   0x3   :  { %847 = vmatpush3.xpose.msk.msra.mxu0 %vm76_vm0, %v47_v0  ;;  %878 = vmatprep.mubr.msk.f32.mxu0 %vm76_vm0, %v48_v4  ;;  %v44_v7 = vld [vmem:[%s1252_s0 + $0x60] sm:$0xff]  ;;  %v54_v8 = vld [vmem:[%s1254_s2 + $0x10] sm:$0xff]  ;;  %v43_v10 = vld [vmem:[%s1252_s0 + $0x58] sm:$0xff] }
   0x4   :  { %848 = vmatprep.subr.msk.mxu0 %vm76_vm0, %v46_v1  ;;  %73 = vperm.xlu0 %942, %v55_v5   ;;  %v52_v9 = vld [vmem:[%s1254_s2] sm:$0xff]  ;;  %v233_v11 = vld [vmem:[%s1255_s4 + $0x18] sm:$0xff]  ;;  %v232_v12 = vld [vmem:[%s1255_s4 + $0x10] sm:$0xff] }
   0x5   :  { %63 = vperm.xlu1 %943, %v53_v6   ;;  %v42_v13 = vld [vmem:[%s1252_s0 + $0x50] sm:$0xff]  ;;  %v231_v14 = vld [vmem:[%s1255_s4 + $0x8] sm:$0xff]  ;;  %v230_v15 = vld [vmem:[%s1255_s4] sm:$0xff] }
   0x6   :  { %v41_v16 = vld [vmem:[%s1252_s0 + $0x48] sm:$0xff]  ;;  %v360_v17 = vld [vmem:[%s1256_s6] sm:$0xff]  ;;  %v362_v20 = vld [vmem:[%s1256_s6 + $0x10] sm:$0xff] }
   0x7   :  { %849 = vmatpush3.xpose.msk.msra.mxu0 %vm76_vm0, %v46_v1  ;;  %v361_v18 = vld [vmem:[%s1256_s6 + $0x8] sm:$0xff]  ;;  %v40_v19 = vld [vmem:[%s1252_s0 + $0x40] sm:$0xff]  ;;  %v363_v21 = vld [vmem:[%s1256_s6 + $0x18] sm:$0xff] }
   0x8   :  { %850 = vmatprep.subr.msk.mxu0 %vm76_vm0, %v45_v3  ;;  %68 = vperm.xlu0 %942, %v54_v8   ;;  %v39_v22 = vld [vmem:[%s1252_s0 + $0x38] sm:$0xff]  ;;  %v38_v23 = vld [vmem:[%s1252_s0 + $0x30] sm:$0xff]  ;;  %v37_v24 = vld [vmem:[%s1252_s0 + $0x28] sm:$0xff] }
   0x9   :  { %58 = vperm.xlu1 %943, %v52_v9   ;;  %v36_v25 = vld [vmem:[%s1252_s0 + $0x20] sm:$0xff]  ;;  %v35_v26 = vld [vmem:[%s1252_s0 + $0x18] sm:$0xff]  ;;  %v34_v27 = vld [vmem:[%s1252_s0 + $0x10] sm:$0xff] }
   0xa   :  { %v33_v28 = vld [vmem:[%s1252_s0 + $0x8] sm:$0xff]  ;;  %v32_v29 = vld [vmem:[%s1252_s0] sm:$0xff]  ;;  %v50_v31 = vld [vmem:[%s1253_s1 + $0x10] sm:$0xff] }
   0xb   :  { %851 = vmatpush3.xpose.msk.msra.mxu0 %vm76_vm0, %v45_v3  ;;  %v49_v30 = vld [vmem:[%s1253_s1 + $0x8] sm:$0xff]  ;;  %v51_v32 = vld [vmem:[%s1253_s1 + $0x18] sm:$0xff]  ;;  %v226_v33 = vld [vmem:[%s1257_s3] sm:$0xff] }
   0xc   :  { %852 = vmatprep.subr.msk.mxu0 %vm76_vm0, %v44_v7  ;;  %251 = vperm.xlu0 %942, %v233_v11   ;;  %v227_v50 = vld [vmem:[%s1257_s3 + $0x8] sm:$0xff]  ;;  %v228_v51 = vld [vmem:[%s1257_s3 + $0x10] sm:$0xff]  ;;  %v229_v52 = vld [vmem:[%s1257_s3 + $0x18] sm:$0xff] }
   0xd   :  { %246 = vperm.xlu1 %943, %v232_v12   ;;  %892 = vmatprep.mubr.msk.f32.mxu1 %vm254_vm1, %v226_v33  ;;  %v356_v53 = vld [vmem:[%s1258_s5] sm:$0xff]  ;;  %v357_v6 = vld [vmem:[%s1258_s5 + $0x8] sm:$0xff]  ;;  %v359_v8 = vld [vmem:[%s1258_s5 + $0x18] sm:$0xff] }
   0xe   :  { %v486_v9 = vld [vmem:[%s1259_s7 + $0x8] sm:$0xff] }
   0xf   :  { %853 = vmatpush3.xpose.msk.msra.mxu0 %vm76_vm0, %v44_v7  ;;  %v358_v7 = vld [vmem:[%s1258_s5 + $0x10] sm:$0xff] }
  0x10   :  { %854 = vmatprep.subr.msk.mxu0 %vm76_vm0, %v43_v10  ;;  %241 = vperm.xlu0 %942, %v231_v14   ;;  %v485_v14 = vld [vmem:[%s1259_s7] sm:$0xff] }
  0x11   :  { %236 = vperm.xlu1 %943, %v230_v15  }
  0x13   :  { %855 = vmatpush3.xpose.msk.msra.mxu0 %vm76_vm0, %v43_v10 }
  0x14   :  { %856 = vmatprep.subr.msk.mxu0 %vm76_vm0, %v42_v13  ;;  %366 = vperm.xlu0 %942, %v360_v17  }
  0x15   :  { %371 = vperm.xlu1 %943, %v361_v18  }
  0x17   :  { %857 = vmatpush3.xpose.msk.msra.mxu0 %vm76_vm0, %v42_v13 }
  0x18   :  { %858 = vmatprep.subr.msk.mxu0 %vm76_vm0, %v41_v16  ;;  %376 = vperm.xlu0 %942, %v362_v20  }
  0x19   :  { %381 = vperm.xlu1 %943, %v363_v21  }
  0x1b   :  { %859 = vmatpush3.xpose.msk.msra.mxu0 %vm76_vm0, %v41_v16 }
  0x1c   :  { %860 = vmatprep.subr.msk.mxu0 %vm76_vm0, %v40_v19 }
  0x1f   :  { %861 = vmatpush3.xpose.msk.msra.mxu0 %vm76_vm0, %v40_v19 }
  0x20   :  { %862 = vmatprep.subr.msk.mxu0 %vm76_vm0, %v39_v22 }
  0x23   :  { %863 = vmatpush3.xpose.msk.msra.mxu0 %vm76_vm0, %v39_v22 }
  0x24   :  { %864 = vmatprep.subr.msk.mxu0 %vm76_vm0, %v38_v23 }
  0x27   :  { %865 = vmatpush3.xpose.msk.msra.mxu0 %vm76_vm0, %v38_v23 }
  0x28   :  { %866 = vmatprep.subr.msk.mxu0 %vm76_vm0, %v37_v24 }
  0x2b   :  { %867 = vmatpush3.xpose.msk.msra.mxu0 %vm76_vm0, %v37_v24 }
  0x2c   :  { %868 = vmatprep.subr.msk.mxu0 %vm76_vm0, %v36_v25 }
  0x2f   :  { %869 = vmatpush3.xpose.msk.msra.mxu0 %vm76_vm0, %v36_v25 }
  0x30   :  { %870 = vmatprep.subr.msk.mxu0 %vm76_vm0, %v35_v26 }
  0x33   :  { %871 = vmatpush3.xpose.msk.msra.mxu0 %vm76_vm0, %v35_v26 }
  0x34   :  { %872 = vmatprep.subr.msk.mxu0 %vm76_vm0, %v34_v27 }
  0x37   :  { %873 = vmatpush3.xpose.msk.msra.mxu0 %vm76_vm0, %v34_v27 }
  0x38   :  { %874 = vmatprep.subr.msk.mxu0 %vm76_vm0, %v33_v28 }
  0x3b   :  { %875 = vmatpush3.xpose.msk.msra.mxu0 %vm76_vm0, %v33_v28 }
  0x3c   :  { %876 = vmatprep.subr.msk.mxu0 %vm76_vm0, %v32_v29 }
  0x3f   :  { %877 = vmatpush3.xpose.msk.msra.mxu0 %vm76_vm0, %v32_v29 }
  0x42   :  { %879 = vmatmul.mubr.msk.f32.vlgmr.msra.gmra.mxu0 %vm76_vm0, %v49_v30 }
  0x43   :  { %881 = vmatprep.mubr.msk.f32.mxu0 %vm76_vm0, %v50_v31 }
  0x46   :  { %882 = vmatmul.mubr.msk.f32.gmra.mxu0 %vm76_vm0, %v51_v32 }
  0x7f   :  { %v74_v34 = vpop.permute.xlu0 %73 }
  0x80   :  { %v64_v36 = vpop.permute.xlu1 %63 }
  0x83   :  { %v69_v40 = vpop.permute.xlu0 %68 }
  0x84   :  { %v59_v45 = vpop.permute.xlu1 %58 }
  0x87   :  { %v252_v54 = vpop.permute.xlu0 %251 }
  0x88   :  { %v247_v56 = vpop.permute.xlu1 %246 }
  0x8b   :  { %v242_v60 = vpop.permute.xlu0 %241 }
  0x8c   :  { %v237_v1 = vpop.permute.xlu1 %236 }
  0x8f   :  { %v367_v11 = vpop.permute.xlu0 %366 }
  0x90   :  { %v372_v15 = vpop.permute.xlu1 %371 }
  0x93   :  { %v377_v20 = vpop.permute.xlu0 %376 }
  0x94   :  { %v382_v23 = vpop.permute.xlu1 %381 }
 0x102   :  { %v880_v35 = vpop.f32.mrf.mxu0 }
 0x103   :  { %v209_v42 = vadd.f32 %v880_v35, %v64_v36 }
 0x104   :  { %v203_v37 = vpop.f32.mrf.mxu0 }
 0x105   :  { %v204_v46 = vadd.f32 %v203_v37, %v59_v45  ;;  %v223_v48 = vmax.f32 %v209_v42, 0.0 }
 0x106   :  { %v883_v38 = vpop.f32.mrf.mxu0 }
 0x107   :  { %v219_v39 = vadd.f32 %v883_v38, %v74_v34  ;;  %v222_v49 = vmax.f32 %v204_v46, 0.0 }
 0x108   :  { %v213_v41 = vpop.f32.mrf.mxu0 }
 0x109   :  { %v225_v43 = vmax.f32 %v219_v39, 0.0  ;;  %v214_v44 = vadd.f32 %v213_v41, %v69_v40 }
 0x10b   :  { %v224_v47 = vmax.f32 %v214_v44, 0.0  ;;  %884 = vmatprep.subr.mxu1 %v225_v43 }
 0x10c   :  { %885 = vmatpush3.msra.mxu1 %v225_v43  ;;  %v773_v43 = vld [vmem:[%s1260_s8] ss:$0 sm:$0xff] }
 0x10d   :  { %886 = vmatprep.subr.mxu1 %v224_v47 }
 0x10e   :  { %887 = vmatpush3.msra.mxu1 %v224_v47 }
 0x10f   :  { %888 = vmatprep.subr.mxu1 %v223_v48 }
 0x110   :  { %889 = vmatpush3.msra.mxu1 %v223_v48 }
 0x111   :  { %890 = vmatprep.subr.mxu1 %v222_v49 }
 0x112   :  { %891 = vmatpush3.msra.mxu1 %v222_v49 }
 0x113   :  { %893 = vmatmul.mubr.msk.f32.vlgmr.msra.gmra.mxu1 %vm254_vm1, %v227_v50 }
 0x114   :  { %895 = vmatprep.mubr.msk.f32.mxu1 %vm254_vm1, %v228_v51 }
 0x117   :  { %896 = vmatmul.mubr.msk.f32.gmra.mxu1 %vm254_vm1, %v229_v52 }
 0x118   :  { %906 = vmatprep.mubr.msk.f32.mxu1 %vm254_vm1, %v356_v53 }
 0x1d3   :  { %v894_v55 = vpop.f32.mrf.mxu1 }
 0x1d4   :  { %v339_v62 = vadd.f32 %v894_v55, %v242_v60 }
 0x1d5   :  { %v333_v57 = vpop.f32.mrf.mxu1 }
 0x1d6   :  { %v334_v2 = vadd.f32 %v333_v57, %v237_v1  ;;  %v353_v4 = vmax.f32 %v339_v62, 0.0 }
 0x1d7   :  { %v897_v58 = vpop.f32.mrf.mxu1 }
 0x1d8   :  { %v349_v59 = vadd.f32 %v897_v58, %v252_v54  ;;  %v352_v5 = vmax.f32 %v334_v2, 0.0 }
 0x1d9   :  { %v343_v61 = vpop.f32.mrf.mxu1 }
 0x1da   :  { %v355_v63 = vmax.f32 %v349_v59, 0.0  ;;  %v344_v0 = vadd.f32 %v343_v61, %v247_v56 }
 0x1dc   :  { %v354_v3 = vmax.f32 %v344_v0, 0.0  ;;  %898 = vmatprep.subr.mxu1 %v355_v63 }
 0x1dd   :  { %899 = vmatpush3.msra.mxu1 %v355_v63 }
 0x1de   :  { %900 = vmatprep.subr.mxu1 %v354_v3 }
 0x1df   :  { %901 = vmatpush3.msra.mxu1 %v354_v3 }
 0x1e0   :  { %902 = vmatprep.subr.mxu1 %v353_v4 }
 0x1e1   :  { %903 = vmatpush3.msra.mxu1 %v353_v4 }
 0x1e2   :  { %904 = vmatprep.subr.mxu1 %v352_v5 }
 0x1e3   :  { %905 = vmatpush3.msra.mxu1 %v352_v5 }
 0x1e4   :  { %907 = vmatmul.mubr.msk.f32.vlgmr.msra.gmra.mxu1 %vm254_vm1, %v357_v6  ;;  %912 = vmatprep.subr.msk.mxu1 %vm254_vm1, %v486_v9 }
 0x1e5   :  { %909 = vmatprep.mubr.msk.f32.mxu1 %vm254_vm1, %v358_v7  ;;  %913 = vmatpush3.xpose.msk.msra.mxu1 %vm254_vm1, %v486_v9 }
 0x1e6   :  { %914 = vmatprep.subr.msk.mxu1 %vm254_vm1, %v485_v14 }
 0x1e8   :  { %910 = vmatmul.mubr.msk.f32.gmra.mxu1 %vm254_vm1, %v359_v8 }
 0x1e9   :  { %915 = vmatpush3.xpose.msk.msra.mxu1 %vm254_vm1, %v485_v14 }
 0x2a4   :  { %v908_v10 = vpop.f32.mrf.mxu1 }
 0x2a5   :  { %v468_v17 = vadd.f32 %v908_v10, %v372_v15 }
 0x2a6   :  { %v462_v12 = vpop.f32.mrf.mxu1 }
 0x2a7   :  { %v463_v13 = vadd.f32 %v462_v12, %v367_v11  ;;  %v482_v21 = vmax.f32 %v468_v17, 0.0 }
 0x2a8   :  { %v911_v16 = vpop.f32.mrf.mxu1 }
 0x2a9   :  { %v481_v18 = vmax.f32 %v463_v13, 0.0  ;;  %v478_v24 = vadd.f32 %v911_v16, %v382_v23 }
 0x2aa   :  { %v472_v19 = vpop.f32.mrf.mxu1 }
 0x2ab   :  { %494 = vxpose.xlu0.b32.start [1/4] (short) %v481_v18, 128  ;;  %v473_v22 = vadd.f32 %v472_v19, %v377_v20  ;;  %v484_v26 = vmax.f32 %v478_v24, 0.0 }
 0x2ad   :  { %v483_v25 = vmax.f32 %v473_v22, 0.0 }
 0x2af   :  { %495 = vxpose.xlu0.b32.cont [2/4] (short) %v482_v21, 128 }
 0x2b3   :  { %496 = vxpose.xlu0.b32.cont [3/4] (short) %v483_v25, 128 }
 0x2b7   :  { %497 = vxpose.xlu0.b32.end [4/4] (short) %v484_v26, 128 }
 0x327   :  { %v510_v27 = vpop.trf.xlu0 }
 0x328   :  { %916 = vmatprep.mubr.msk.f32.mxu1 %vm254_vm1, %v510_v27 }
 0x32b   :  { %v511_v28 = vpop.trf.xlu0 }
 0x32c   :  { %917 = vmatmul.mubr.msk.f32.vlgmr.msra.gmra.mxu1 %vm254_vm1, %v511_v28 }
 0x32f   :  { %v512_v29 = vpop.trf.xlu0 }
 0x330   :  { %919 = vmatprep.mubr.msk.f32.mxu1 %vm254_vm1, %v512_v29 }
 0x333   :  { %v513_v30 = vpop.trf.xlu0 }
 0x334   :  { %920 = vmatmul.mubr.msk.f32.gmra.mxu1 %vm254_vm1, %v513_v30 }
 0x337   :  { %v514_v31 = vpop.trf.xlu0 }
 0x338   :  { %922 = vmatprep.mubr.msk.f32.mxu1 %vm254_vm1, %v514_v31 }
 0x33b   :  { %v515_v32 = vpop.trf.xlu0 }
 0x33c   :  { %923 = vmatmul.mubr.msk.f32.gmra.mxu1 %vm254_vm1, %v515_v32 }
 0x33f   :  { %v516_v33 = vpop.trf.xlu0 }
 0x340   :  { %925 = vmatprep.mubr.msk.f32.mxu1 %vm254_vm1, %v516_v33 }
 0x343   :  { %v517_v34 = vpop.trf.xlu0 }
 0x344   :  { %926 = vmatmul.mubr.msk.f32.gmra.mxu1 %vm254_vm1, %v517_v34 }
 0x347   :  { %v518_v35 = vpop.trf.xlu0 }
 0x348   :  { %928 = vmatprep.mubr.msk.f32.mxu1 %vm254_vm1, %v518_v35 }
 0x34b   :  { %v519_v36 = vpop.trf.xlu0 }
 0x34c   :  { %929 = vmatmul.mubr.msk.f32.gmra.mxu1 %vm254_vm1, %v519_v36 }
 0x34f   :  { %v520_v37 = vpop.trf.xlu0 }
 0x350   :  { %931 = vmatprep.mubr.msk.f32.mxu1 %vm254_vm1, %v520_v37 }
 0x353   :  { %v521_v38 = vpop.trf.xlu0 }
 0x354   :  { %932 = vmatmul.mubr.msk.f32.gmra.mxu1 %vm254_vm1, %v521_v38 }
 0x357   :  { %v522_v39 = vpop.trf.xlu0 }
 0x358   :  { %934 = vmatprep.mubr.msk.f32.mxu1 %vm254_vm1, %v522_v39 }
 0x35b   :  { %v523_v40 = vpop.trf.xlu0 }
 0x35c   :  { %935 = vmatmul.mubr.msk.f32.gmra.mxu1 %vm254_vm1, %v523_v40 }
 0x35f   :  { %v524_v41 = vpop.trf.xlu0 }
 0x360   :  { %937 = vmatprep.mubr.msk.f32.mxu1 %vm254_vm1, %v524_v41 }
 0x363   :  { %v525_v42 = vpop.trf.xlu0 }
 0x364   :  { %938 = vmatmul.mubr.msk.f32.gmra.mxu1 %vm254_vm1, %v525_v42 }
 0x3ec   :  { %v918_v44 = vpop.f32.mrf.mxu1 }
 0x3ed   :  { %v652_v45 = vadd.f32 %v918_v44, %v773_v43 }
 0x3ee   :  { %v646_v46 = vpop.f32.mrf.mxu1 }
 0x3ef   :  { %726 = vst.msk [vmem:[%s1261_s9 + $0x8] sm:$0xff] %vm76_vm0, %v652_v45  ;;  %v647_v47 = vadd.f32 %v773_v43, %v646_v46 }
 0x3f1   :  { %725 = vst.msk [vmem:[%s1261_s9] sm:$0xff] %vm76_vm0, %v647_v47 }
 0x3f4   :  { %v921_v48 = vpop.f32.mrf.mxu1 }
 0x3f5   :  { %v662_v49 = vadd.f32 %v921_v48, %v773_v43 }
 0x3f6   :  { %v656_v50 = vpop.f32.mrf.mxu1 }
 0x3f7   :  { %728 = vst.msk [vmem:[%s1261_s9 + $0x18] sm:$0xff] %vm76_vm0, %v662_v49  ;;  %v657_v51 = vadd.f32 %v773_v43, %v656_v50 }
 0x3f9   :  { %727 = vst.msk [vmem:[%s1261_s9 + $0x10] sm:$0xff] %vm76_vm0, %v657_v51 }
 0x3fc   :  { %v924_v52 = vpop.f32.mrf.mxu1 }
 0x3fd   :  { %v672_v53 = vadd.f32 %v924_v52, %v773_v43 }
 0x3fe   :  { %v666_v54 = vpop.f32.mrf.mxu1 }
 0x3ff   :  { %730 = vst.msk [vmem:[%s1261_s9 + $0x28] sm:$0xff] %vm76_vm0, %v672_v53  ;;  %v667_v55 = vadd.f32 %v773_v43, %v666_v54 }
 0x401   :  { %729 = vst.msk [vmem:[%s1261_s9 + $0x20] sm:$0xff] %vm76_vm0, %v667_v55 }
 0x404   :  { %v927_v56 = vpop.f32.mrf.mxu1 }
 0x405   :  { %v682_v57 = vadd.f32 %v927_v56, %v773_v43 }
 0x406   :  { %v676_v58 = vpop.f32.mrf.mxu1 }
 0x407   :  { %732 = vst.msk [vmem:[%s1261_s9 + $0x38] sm:$0xff] %vm76_vm0, %v682_v57  ;;  %v677_v59 = vadd.f32 %v773_v43, %v676_v58 }
 0x409   :  { %731 = vst.msk [vmem:[%s1261_s9 + $0x30] sm:$0xff] %vm76_vm0, %v677_v59 }
 0x40c   :  { %v930_v60 = vpop.f32.mrf.mxu1 }
 0x40d   :  { %v692_v61 = vadd.f32 %v930_v60, %v773_v43 }
 0x40e   :  { %v686_v62 = vpop.f32.mrf.mxu1 }
 0x40f   :  { %734 = vst.msk [vmem:[%s1261_s9 + $0x48] sm:$0xff] %vm76_vm0, %v692_v61  ;;  %v687_v63 = vadd.f32 %v773_v43, %v686_v62 }
 0x411   :  { %733 = vst.msk [vmem:[%s1261_s9 + $0x40] sm:$0xff] %vm76_vm0, %v687_v63 }
 0x414   :  { %v933_v0 = vpop.f32.mrf.mxu1 }
 0x415   :  { %v702_v1 = vadd.f32 %v933_v0, %v773_v43 }
 0x416   :  { %v696_v2 = vpop.f32.mrf.mxu1 }
 0x417   :  { %736 = vst.msk [vmem:[%s1261_s9 + $0x58] sm:$0xff] %vm76_vm0, %v702_v1  ;;  %v697_v3 = vadd.f32 %v773_v43, %v696_v2 }
 0x419   :  { %735 = vst.msk [vmem:[%s1261_s9 + $0x50] sm:$0xff] %vm76_vm0, %v697_v3 }
 0x41c   :  { %v936_v4 = vpop.f32.mrf.mxu1 }
 0x41d   :  { %v712_v5 = vadd.f32 %v936_v4, %v773_v43 }
 0x41e   :  { %v706_v6 = vpop.f32.mrf.mxu1 }
 0x41f   :  { %738 = vst.msk [vmem:[%s1261_s9 + $0x68] sm:$0xff] %vm76_vm0, %v712_v5  ;;  %v707_v7 = vadd.f32 %v773_v43, %v706_v6 }
 0x421   :  { %737 = vst.msk [vmem:[%s1261_s9 + $0x60] sm:$0xff] %vm76_vm0, %v707_v7 }
 0x424   :  { %v939_v8 = vpop.f32.mrf.mxu1 }
 0x425   :  { %v722_v9 = vadd.f32 %v939_v8, %v773_v43 }
 0x426   :  { %v716_v10 = vpop.f32.mrf.mxu1 }
 0x427   :  { %740 = vst.msk [vmem:[%s1261_s9 + $0x78] sm:$0xff] %vm76_vm0, %v722_v9  ;;  %v717_v11 = vadd.f32 %v773_v43, %v716_v10 }
 0x429   :  { %739 = vst.msk [vmem:[%s1261_s9 + $0x70] sm:$0xff] %vm76_vm0, %v717_v11 }

</bundles_post_ra>
